<compile_context>
chip_gen: v7x
topology: tpu7x:2x2x1
jax: 0.10.0
libtpu: 0.0.40
codegen_flags: <defaults>
</compile_context>

<pallas_src>
import functools

import jax
import jax.numpy as jnp
from jax.experimental import pallas as pl
from jax.experimental.pallas import tpu as pltpu


# --------------------------------------------------------------------------- kernels

def _fused_kernel(x_ref, w1_ref, w2_ref, o_ref, *, inv_hw):
    """Whole-activation-in-VMEM path: pool + FC gate + scale in one kernel.

    x_ref  : (B, C, HW)  input (any float dtype)
    w1_ref : (C, Ch) f32, w2_ref : (Ch, C) f32
    o_ref  : (B, C, HW)  output, same dtype as x
    """
    x = x_ref[...].astype(jnp.float32)
    mean = jnp.sum(x, axis=-1) * inv_hw                                   # (B, C)
    h = jnp.maximum(jnp.dot(mean, w1_ref[...],
                            preferred_element_type=jnp.float32), 0.0)     # (B, Ch)
    gate = jax.nn.sigmoid(jnp.dot(h, w2_ref[...],
                                  preferred_element_type=jnp.float32))    # (B, C)
    o_ref[...] = (x * gate[:, :, None]).astype(o_ref.dtype)


def _pool_kernel(x_ref, mean_ref, acc_ref, *, hw, blk, inv_hw, mask_lanes):
    """Global average pool over the flattened spatial axis (streamed, accumulated).

    Grid = (channel_groups ["parallel"], spatial_blocks ["arbitrary"]).
    x_ref   : (B, Cg, blk)  lane-dense spatial block of one channel group
    mean_ref: (B, Cg)       per-group pooled mean, written on the last spatial step
    acc_ref : (B, Cg) f32   per-group (per-core) VMEM accumulator
    """
    j = pl.program_id(1)

    @pl.when(j == 0)
    def _init():
        acc_ref[...] = jnp.zeros_like(acc_ref)

    xb = x_ref[...].astype(jnp.float32)
    if mask_lanes:
        # Last spatial block may overhang the true extent; zero the invalid lanes
        # (their VMEM contents are undefined for clipped edge DMAs).
        lane = jax.lax.broadcasted_iota(jnp.int32, xb.shape, dimension=2)
        xb = jnp.where(j * blk + lane < hw, xb, 0.0)
    acc_ref[...] += jnp.sum(xb, axis=-1)

    @pl.when(j == pl.num_programs(1) - 1)
    def _finalize():
        mean_ref[...] = acc_ref[...] * inv_hw


def _scale_kernel(x_ref, gate_ref, o_ref):
    """o = x * gate, broadcasting the (B, C) gate over the lane-dense spatial block."""
    g = gate_ref[...]                                                      # (B, C) f32
    o_ref[...] = (x_ref[...].astype(jnp.float32) * g[:, :, None]).astype(o_ref.dtype)


# --------------------------------------------------------------------------- helpers

@functools.lru_cache(maxsize=None)
def _vmem_limit_bytes():
    """Generation-aware scoped-VMEM limit (~3/4 of capacity: 48 MiB v7x, 96 MiB v5e/v6e)."""
    cap = 64 << 20  # conservative default (v7x per-core VMEM)
    try:
        cap = int(pltpu.get_tpu_info().vmem_capacity_bytes)
    except Exception:
        pass
    return (cap * 3) // 4


def _pick_spatial_block(hw, rows, itemsize, n_streams, vmem_limit):
    """Lane-dense spatial block (multiple of 128, or the full extent if it fits).

    Targets 1-4 MiB tiles (>= ~85% of HBM roofline) while keeping `n_streams`
    double-buffered tiles well inside the VMEM budget.
    """
    tile_budget = max(1 << 20, min(4 << 20, vmem_limit // (4 * n_streams)))
    bytes_per_lane = max(1, rows * itemsize)
    max_lanes = max(128, (tile_budget // bytes_per_lane) // 128 * 128)
    if hw <= max_lanes:
        return int(hw)          # single full-extent block (any length is legal)
    return int(max_lanes)       # multiple of 128; partial last block handled by masking


def init_se_params(key, channel, reduction=16):
    """Bias-free Linear weights, stored transposed so the kernel computes x @ W."""
    hidden = channel // reduction
    assert hidden >= 1, "channel must be >= reduction"
    k1, k2 = jax.random.split(key)
    bound1 = 1.0 / float(channel) ** 0.5
    bound2 = 1.0 / float(hidden) ** 0.5
    return {
        "fc1_w": jax.random.uniform(k1, (channel, hidden), jnp.float32, -bound1, bound1),
        "fc2_w": jax.random.uniform(k2, (hidden, channel), jnp.float32, -bound2, bound2),
    }


# --------------------------------------------------------------------------- wrapper

@functools.partial(jax.jit, static_argnames=("force_two_pass", "block_lanes"))
def se_layer_forward(x_nchw, params, force_two_pass=False, block_lanes=None):
    """SELayer.forward: (B, C, H, W) -> (B, C, H, W), preserving the input dtype."""
    B, C, H, W = x_nchw.shape
    hw = H * W
    dtype = x_nchw.dtype
    itemsize = dtype.itemsize
    w1 = params["fc1_w"].astype(jnp.float32)   # (C, Ch)
    w2 = params["fc2_w"].astype(jnp.float32)   # (Ch, C)

    x_flat = x_nchw.reshape(B, C, hw)          # free metadata reshape, original dtype
    vmem_limit = _vmem_limit_bytes()
    inv_hw = 1.0 / float(hw)

    # ---- fused single-pass path (2x |x| HBM traffic) when x fits comfortably in VMEM
    fused_ok = (B * C * hw * 4) * 4 <= vmem_limit   # f32 temp + in/out buffers, conservative
    if fused_ok and not force_two_pass:
        out = pl.pallas_call(
            functools.partial(_fused_kernel, inv_hw=inv_hw),
            out_shape=jax.ShapeDtypeStruct((B, C, hw), dtype),
            compiler_params=pltpu.CompilerParams(vmem_limit_bytes=vmem_limit),
        )(x_flat, w1, w2)
        return out.reshape(B, C, H, W)

    # ---- pass 1: streamed global average pool -----------------------------------------
    # Channel groups give a "parallel" grid axis (both TensorCores on v7x). The pooled
    # output block last-dim must be a multiple of 128 (or full C), hence C % 256 == 0.
    G = 2 if (C % 256 == 0) else 1
    Cg = C // G
    if block_lanes:
        blk1 = min(int(block_lanes), hw)
    else:
        blk1 = _pick_spatial_block(hw, B * Cg, itemsize, 1, vmem_limit)
    n1 = pl.cdiv(hw, blk1)

    mean = pl.pallas_call(
        functools.partial(_pool_kernel, hw=hw, blk=blk1, inv_hw=inv_hw,
                          mask_lanes=(hw % blk1 != 0)),
        out_shape=jax.ShapeDtypeStruct((B, C), jnp.float32),
        grid=(G, n1),
        in_specs=[pl.BlockSpec((B, Cg, blk1), lambda g, j: (0, g, j))],
        out_specs=pl.BlockSpec((B, Cg), lambda g, j: (0, g)),
        scratch_shapes=[pltpu.VMEM((B, Cg), jnp.float32)],
        compiler_params=pltpu.CompilerParams(
            dimension_semantics=("parallel", "arbitrary"),
            vmem_limit_bytes=vmem_limit),
    )(x_flat)

    # ---- tiny FC -> ReLU -> FC -> sigmoid gate in plain XLA (keeps pass 1 parallel) ----
    h = jnp.maximum(mean @ w1, 0.0)
    gate = jax.nn.sigmoid(h @ w2)                                   # (B, C) f32

    # ---- pass 2: channel-wise scaling, lane-dense spatial blocks, "parallel" ----------
    if block_lanes:
        blk2 = min(int(block_lanes), hw)
    else:
        blk2 = _pick_spatial_block(hw, B * C, itemsize, 2, vmem_limit)
    n2 = pl.cdiv(hw, blk2)

    out = pl.pallas_call(
        _scale_kernel,
        out_shape=jax.ShapeDtypeStruct((B, C, hw), dtype),
        grid=(n2,),
        in_specs=[pl.BlockSpec((B, C, blk2), lambda j: (0, 0, j)),
                  pl.BlockSpec((B, C), lambda j: (0, 0))],
        out_specs=pl.BlockSpec((B, C, blk2), lambda j: (0, 0, j)),
        compiler_params=pltpu.CompilerParams(
            dimension_semantics=("parallel",),
            vmem_limit_bytes=vmem_limit),
    )(x_flat, gate)

    return out.reshape(B, C, H, W)


# --------------------------------------------------------------------------- reference

def _se_reference(x, params):
    xf = x.astype(jnp.float32)
    m = jnp.mean(xf, axis=(2, 3))                                   # (B, C)
    h = jnp.maximum(m @ params["fc1_w"], 0.0)
    s = jax.nn.sigmoid(h @ params["fc2_w"])
    return (xf * s[:, :, None, None]).astype(x.dtype)


if __name__ == "__main__":
    key = jax.random.PRNGKey(0)
    kx1, kx2, kp1, kp2 = jax.random.split(key, 4)

    # Case 1: f32, 128-aligned spatial -> fused single-pass kernel.
    B, C, H, W = 2, 64, 16, 16
    params1 = init_se_params(kp1, C, reduction=16)
    x1 = jax.random.normal(kx1, (B, C, H, W), jnp.float32)
    out1 = se_layer_forward(x1, params1)
    jax.block_until_ready(out1)
    ref1 = _se_reference(x1, params1)
    assert out1.shape == x1.shape, out1.shape
    assert bool(jnp.allclose(out1, ref1, atol=1e-5, rtol=1e-5)), \
        float(jnp.max(jnp.abs(out1 - ref1)))

    # Case 2: bf16, non-multiple-of-128 spatial, forced two-pass streaming pipeline
    # (exercises channel groups, masked partial spatial block, dtype preservation).
    B2, C2, H2, W2 = 2, 256, 12, 12
    params2 = init_se_params(kp2, C2, reduction=16)
    x2 = jax.random.normal(kx2, (B2, C2, H2, W2), jnp.bfloat16)
    out2 = se_layer_forward(x2, params2, force_two_pass=True, block_lanes=128)
    jax.block_until_ready(out2)
    ref2 = _se_reference(x2, params2)
    assert out2.shape == x2.shape, out2.shape
    assert out2.dtype == x2.dtype, out2.dtype
    diff = float(jnp.max(jnp.abs(out2.astype(jnp.float32) - ref2.astype(jnp.float32))))
    assert diff < 3e-2, diff

    print("KERNEL_OK")
</pallas_src>

<mosaic_0001>
module attributes {stable_mosaic.version = 11 : i64} {
  func.func @_fused_kernel(%arg0: memref<2x64x256xf32, #tpu.memory_space<vmem>>, %arg1: memref<64x4xf32, #tpu.memory_space<vmem>>, %arg2: memref<4x64xf32, #tpu.memory_space<vmem>>, %arg3: memref<2x64x256xf32, #tpu.memory_space<vmem>>) attributes {dimension_semantics = [], scalar_prefetch = 0 : i64, scratch_operands = 0 : i64, tpu.core_type = #tpu.core_type<tc>} {
    %c0 = arith.constant 0 : index
    %c0_0 = arith.constant 0 : index
    %c0_1 = arith.constant 0 : index
    %0 = vector.load %arg0[%c0, %c0_0, %c0_1] : memref<2x64x256xf32, #tpu.memory_space<vmem>>, vector<2x64x256xf32>
    %cst = arith.constant dense<0.000000e+00> : vector<2x64xf32>
    %1 = vector.multi_reduction <add>, %0, %cst [2] : vector<2x64x256xf32> to vector<2x64xf32>
    %cst_2 = arith.constant 3.906250e-03 : f32
    %2 = vector.broadcast %cst_2 : f32 to vector<2x64xf32>
    %3 = arith.mulf %1, %2 : vector<2x64xf32>
    %c0_3 = arith.constant 0 : index
    %c0_4 = arith.constant 0 : index
    %4 = vector.load %arg1[%c0_3, %c0_4] : memref<64x4xf32, #tpu.memory_space<vmem>>, vector<64x4xf32>
    %cst_5 = arith.constant dense<0.000000e+00> : vector<2x4xf32>
    %5 = tpu.matmul %3, %4, %cst_5 {dimension_numbers = #tpu.dot_dimension_numbers<[1], [0], [0], [1], [0, 0, 1, 1], [], []>} : vector<2x64xf32>, vector<64x4xf32>, vector<2x4xf32> -> vector<2x4xf32>
    %cst_6 = arith.constant 0.000000e+00 : f32
    %6 = vector.broadcast %cst_6 : f32 to vector<2x4xf32>
    %7 = arith.maximumf %5, %6 : vector<2x4xf32>
    %c0_7 = arith.constant 0 : index
    %c0_8 = arith.constant 0 : index
    %8 = vector.load %arg2[%c0_7, %c0_8] : memref<4x64xf32, #tpu.memory_space<vmem>>, vector<4x64xf32>
    %cst_9 = arith.constant dense<0.000000e+00> : vector<2x64xf32>
    %9 = tpu.matmul %7, %8, %cst_9 {dimension_numbers = #tpu.dot_dimension_numbers<[1], [0], [0], [1], [0, 0, 1, 1], [], []>} : vector<2x4xf32>, vector<4x64xf32>, vector<2x64xf32> -> vector<2x64xf32>
    %10 = arith.negf %9 : vector<2x64xf32>
    %11 = math.exp %10 : vector<2x64xf32>
    %cst_10 = arith.constant 1.000000e+00 : f32
    %12 = vector.broadcast %cst_10 : f32 to vector<2x64xf32>
    %13 = arith.addf %12, %11 : vector<2x64xf32>
    %14 = arith.divf %12, %13 : vector<2x64xf32>
    %15 = vector.shape_cast %14 : vector<2x64xf32> to vector<2x64x1xf32>
    %16 = vector.broadcast %15 : vector<2x64x1xf32> to vector<2x64x256xf32>
    %17 = arith.mulf %0, %16 : vector<2x64x256xf32>
    %c0_11 = arith.constant 0 : index
    %c0_12 = arith.constant 0 : index
    %c0_13 = arith.constant 0 : index
    %18 = vector.load %arg3[%c0_11, %c0_12, %c0_13] : memref<2x64x256xf32, #tpu.memory_space<vmem>>, vector<2x64x256xf32>
    tpu.vector_store %arg3[%c0_11, %c0_12, %c0_13], %17 {strides = array<i32>} : memref<2x64x256xf32, #tpu.memory_space<vmem>>, vector<2x64x256xf32>,
    return
  }
}

</mosaic_0001>

<bundles_post_ra>
// kernel: se_layer_forward.1
= control target key start
LH: loop header
LB: loop body
LE: loop exit
PB: predicated region body
PF: predicated region fallthrough
CT: control target
= control target key end

     0   :  { %v585_v51 = vmov 0.0|0.0   ;;  %vm586_vm0 = vmmov 0   ;;  %v587_v61 = vmov 0.0   ;;  %vm145_vm1 = vcmask 130112   ;;  %s979_s0 = inlined_call_operand.vmem [shape: f32[2,64,256], index: 0, kind: input, shape index: {}]   ;;  %s980_s1 = inlined_call_operand.vmem [shape: f32[64,4], index: 1, kind: input, shape index: {}]   ;;  %s981_s2 = inlined_call_operand.vmem [shape: f32[4,64], index: 2, kind: input, shape index: {}]   ;;  %s982_s3 = inlined_call_operand.vmem [shape: f32[2,64,256], index: 3, kind: output, shape index: {}]  }
   0x1   :  { %v611_v0 = vld [vmem:[%s979_s0 + $0x80] sm:$0xff]  ;;  %v616_v1 = vld [vmem:[%s979_s0 + $0x88] sm:$0xff]  ;;  %v633_v5 = vld [vmem:[%s979_s0 + $0x90] sm:$0xff]  ;;  %566 = vmatprep.subr.bf16.mxu0 %v585_v51  ;;  %558 = vmatprep.mubr.msk.f32.mxu0 %vm586_vm0, %v587_v61  ;;  %vm152_vm2 = vcmask 195712   ;;  %vm159_vm3 = vcmask 261312   ;;  %vm166_vm4 = vcmask 326912  }
   0x2   :  { %v621_v2 = vld [vmem:[%s979_s0] sm:$0xff]  ;;  %v70_v3 = vadd.f32 %v616_v1, %v611_v0  ;;  %v628_v4 = vld [vmem:[%s979_s0 + $0x8] sm:$0xff]  ;;  %v638_v6 = vld [vmem:[%s979_s0 + $0x98] sm:$0xff]  ;;  %561 = vmatprep.subr.mxu1 %v587_v61  ;;  %563 = vmatprep.mubr.msk.f32.mxu1 %vm586_vm0, %v587_v61  ;;  %vm173_vm5 = vcmask 392512   ;;  %vm180_vm6 = vcmask 458112   ;;  %vm187_vm7 = vcmask 523712  }
   0x3   :  { %v46_v7 = vadd.f32 %v628_v4, %v621_v2  ;;  %v645_v8 = vld [vmem:[%s979_s0 + $0x10] sm:$0xff]  ;;  %v650_v9 = vld [vmem:[%s979_s0 + $0x18] sm:$0xff]  ;;  %v73_v10 = vadd.f32 %v638_v6, %v633_v5  ;;  %v659_v12 = vld [vmem:[%s979_s0 + $0xa0] sm:$0xff]  ;;  %vm228_vm8 = vcmask 1041409   ;;  %vm230_vm9 = vcmask 523264  }
   0x4   :  { %71 = vadd.xlane.f32.xlu1 %v70_v3  ;;  %v49_v11 = vadd.f32 %v650_v9, %v645_v8  ;;  %v664_v13 = vld [vmem:[%s979_s0 + $0xa8] sm:$0xff]  ;;  %v669_v14 = vld [vmem:[%s979_s0 + $0x20] sm:$0xff]  ;;  %v683_v18 = vld [vmem:[%s979_s0 + $0xb0] sm:$0xff]  ;;  %vm309_vm10 = vcmask 1043456   ;;  %vm305_vm11 = vcmask 31744  }
   0x5   :  { %47 = vadd.xlane.f32.xlu0 %v46_v7  ;;  %v674_v15 = vld [vmem:[%s979_s0 + $0x28] sm:$0xff]  ;;  %v76_v16 = vadd.f32 %v664_v13, %v659_v12  ;;  %v688_v19 = vld [vmem:[%s979_s0 + $0xb8] sm:$0xff]  ;;  %v693_v20 = vld [vmem:[%s979_s0 + $0x30] sm:$0xff] }
   0x6   :  { %v52_v17 = vadd.f32 %v674_v15, %v669_v14  ;;  %990 = vst [vmem:[#allocation2_spill] sm:$0xff] %v688_v19  ;;  %v698_v21 = vld [vmem:[%s979_s0 + $0x38] sm:$0xff]  ;;  %v79_v22 = vadd.f32 %v688_v19, %v683_v18  ;;  %v707_v24 = vld [vmem:[%s979_s0 + $0xc0] sm:$0xff]  ;;  %v712_v25 = vld [vmem:[%s979_s0 + $0xc8] sm:$0xff] }
   0x7   :  { %v55_v23 = vadd.f32 %v698_v21, %v693_v20  ;;  %v717_v26 = vld [vmem:[%s979_s0 + $0x40] sm:$0xff]  ;;  %v722_v27 = vld [vmem:[%s979_s0 + $0x48] sm:$0xff]  ;;  %v82_v28 = vadd.f32 %v712_v25, %v707_v24  ;;  %v731_v30 = vld [vmem:[%s979_s0 + $0xd0] sm:$0xff] }
   0x8   :  { %74 = vadd.xlane.f32.xlu1 %v73_v10  ;;  %v58_v29 = vadd.f32 %v722_v27, %v717_v26  ;;  %991 = vst [vmem:[#allocation3_spill] sm:$0xff] %v731_v30  ;;  %v736_v31 = vld [vmem:[%s979_s0 + $0xd8] sm:$0xff]  ;;  %v741_v32 = vld [vmem:[%s979_s0 + $0x50] sm:$0xff]  ;;  %v755_v36 = vld [vmem:[%s979_s0 + $0xe0] sm:$0xff]  ;;  %v134_v10 = vlaneseq }
   0x9   :  { %50 = vadd.xlane.f32.xlu0 %v49_v11  ;;  %992 = vst [vmem:[#allocation4_spill] sm:$0xff] %v736_v31  ;;  %v746_v33 = vld [vmem:[%s979_s0 + $0x58] sm:$0xff]  ;;  %v85_v34 = vadd.f32 %v736_v31, %v731_v30  ;;  %993 = vst [vmem:[#allocation5_spill] sm:$0xff] %v755_v36  ;;  %v760_v37 = vld [vmem:[%s979_s0 + $0xe8] sm:$0xff] }
   0xa   :  { %v61_v35 = vadd.f32 %v746_v33, %v741_v32  ;;  %994 = vst [vmem:[#allocation6_spill] sm:$0xff] %v760_v37  ;;  %v765_v38 = vld [vmem:[%s979_s0 + $0x60] sm:$0xff]  ;;  %v770_v39 = vld [vmem:[%s979_s0 + $0x68] sm:$0xff]  ;;  %v88_v40 = vadd.f32 %v760_v37, %v755_v36  ;;  %v779_v42 = vld [vmem:[%s979_s0 + $0xf0] sm:$0xff] }
   0xb   :  { %v64_v41 = vadd.f32 %v770_v39, %v765_v38  ;;  %995 = vst [vmem:[#allocation7_spill] sm:$0xff] %v779_v42  ;;  %v784_v43 = vld [vmem:[%s979_s0 + $0xf8] sm:$0xff]  ;;  %v789_v44 = vld [vmem:[%s979_s0 + $0x70] sm:$0xff]  ;;  %v110_v48 = vld [vmem:[%s980_s1] sm:$0xff] }
   0xc   :  { %77 = vadd.xlane.f32.xlu1 %v76_v16  ;;  %996 = vst [vmem:[#allocation8_spill] sm:$0xff] %v784_v43  ;;  %v794_v45 = vld [vmem:[%s979_s0 + $0x78] sm:$0xff]  ;;  %v91_v46 = vadd.f32 %v784_v43, %v779_v42  ;;  %v111_v49 = vld [vmem:[%s980_s1 + $0x8] sm:$0xff]  ;;  %v112_v52 = vld [vmem:[%s980_s1 + $0x10] sm:$0xff] }
   0xd   :  { %53 = vadd.xlane.f32.xlu0 %v52_v17  ;;  %v67_v47 = vadd.f32 %v794_v45, %v789_v44  ;;  %v567_v50 = vpack.c.bf16 %v111_v49, %v110_v48  ;;  %v113_v53 = vld [vmem:[%s980_s1 + $0x18] sm:$0xff]  ;;  %v114_v55 = vld [vmem:[%s980_s1 + $0x20] sm:$0xff]  ;;  %v115_v56 = vld [vmem:[%s980_s1 + $0x28] sm:$0xff]  ;;  %v135_v17 = vand.u32 127, %v134_v10 }
   0xe   :  { %v570_v54 = vpack.c.bf16 %v113_v53, %v112_v52  ;;  %v573_v57 = vpack.c.bf16 %v115_v56, %v114_v55  ;;  %v116_v58 = vld [vmem:[%s980_s1 + $0x30] sm:$0xff]  ;;  %v117_v59 = vld [vmem:[%s980_s1 + $0x38] sm:$0xff] }
   0xf   :  { %568 = vmatpush3.bf16.msra.mxu0 %v567_v50  ;;  %v576_v60 = vpack.c.bf16 %v117_v59, %v116_v58 }
  0x10   :  { %80 = vadd.xlane.f32.xlu1 %v79_v22  ;;  %569 = vmatprep.subr.bf16.mxu0 %v585_v51 }
  0x11   :  { %56 = vadd.xlane.f32.xlu0 %v55_v23  ;;  %v824_v23 = vshrl.u32 %v134_v10, 7 }
  0x13   :  { %571 = vmatpush3.bf16.msra.mxu0 %v570_v54 }
  0x14   :  { %83 = vadd.xlane.f32.xlu1 %v82_v28  ;;  %572 = vmatprep.subr.bf16.mxu0 %v585_v51 }
  0x15   :  { %59 = vadd.xlane.f32.xlu0 %v58_v29  ;;  %v140_v29 = vadd.s32 4294967288, %v135_v17 }
  0x17   :  { %574 = vmatpush3.bf16.msra.mxu0 %v573_v57  ;;  %v143_v49 = vsub.s32 %v140_v29, %v824_v23 }
  0x18   :  { %86 = vadd.xlane.f32.xlu1 %v85_v34  ;;  %575 = vmatprep.subr.bf16.mxu0 %v585_v51  ;;  %v147_v34 = vadd.s32 4294967280, %v135_v17  ;;  %v175_v51 = vadd.s32 4294967248, %v135_v17 }
  0x19   :  { %62 = vadd.xlane.f32.xlu0 %v61_v35  ;;  %v154_v35 = vadd.s32 4294967272, %v135_v17 }
  0x1a   :  { %v150_v50 = vsub.s32 %v147_v34, %v824_v23 }
  0x1b   :  { %577 = vmatpush3.bf16.msra.mxu0 %v576_v60  ;;  %v157_v53 = vsub.s32 %v154_v35, %v824_v23 }
  0x1c   :  { %89 = vadd.xlane.f32.xlu1 %v88_v40  ;;  %v161_v40 = vadd.s32 4294967264, %v135_v17 }
  0x1d   :  { %65 = vadd.xlane.f32.xlu0 %v64_v41 }
  0x1e   :  { %v164_v54 = vsub.s32 %v161_v40, %v824_v23  ;;  %v182_v40 = vadd.s32 4294967240, %v135_v17 }
  0x20   :  { %92 = vadd.xlane.f32.xlu1 %v91_v46  ;;  %v168_v46 = vadd.s32 4294967256, %v135_v17 }
  0x21   :  { %68 = vadd.xlane.f32.xlu0 %v67_v47  ;;  %v138_v47 = vsub.s32 %v135_v17, %v824_v23  ;;  %v185_v17 = vsub.s32 %v182_v40, %v824_v23 }
  0x22   :  { %v171_v57 = vsub.s32 %v168_v46, %v824_v23 }
  0x91   :  { %v72_v62 = vpop.xlane.xlu1 %71 }
  0x92   :  { %v48_v63 = vpop.xlane.xlu0 %47  ;;  %v102_v59 = vmul.f32 0.00390625, %v72_v62 }
  0x93   :  { %v94_v29 = vmul.f32 0.00390625, %v48_v63 }
  0x94   :  { %v192_v37 = vrot.slane %v102_v59, %v138_v47 }
  0x95   :  { %v75_v3 = vpop.xlane.xlu1 %74  ;;  %v139_v19 = vrot.slane %v94_v29, %v138_v47 }
  0x96   :  { %v51_v7 = vpop.xlane.xlu0 %50  ;;  %v103_v52 = vmul.f32 0.00390625, %v75_v3  ;;  %v178_v3 = vsub.s32 %v175_v51, %v824_v23 }
  0x97   :  { %v95_v55 = vmul.f32 0.00390625, %v51_v7 }
  0x98   :  { %v196_v35 = vrot.slane %v103_v52, %v143_v49 }
  0x99   :  { %v78_v11 = vpop.xlane.xlu1 %77  ;;  %v144_v7 = vrot.slane %v95_v55, %v143_v49 }
  0x9a   :  { %v54_v16 = vpop.xlane.xlu0 %53  ;;  %v104_v56 = vmul.f32 0.00390625, %v78_v11  ;;  %v197_v51 = vsel %vm145_vm1, %v196_v35, %v192_v37  ;;  %v304_v35 = vld [vmem:[%s981_s2] sm:$0xf] }
  0x9b   :  { %v96_v60 = vmul.f32 0.00390625, %v54_v16  ;;  %v146_v49 = vsel %vm145_vm1, %v144_v7, %v139_v19  ;;  %562 = vmatpush3.msk.msra.mxu1 %vm309_vm10, %v304_v35 }
  0x9c   :  { %v201_v11 = vrot.slane %v104_v56, %v150_v50 }
  0x9d   :  { %v81_v22 = vpop.xlane.xlu1 %80  ;;  %v151_v62 = vrot.slane %v96_v60, %v150_v50 }
  0x9e   :  { %v57_v28 = vpop.xlane.xlu0 %56  ;;  %v105_v61 = vmul.f32 0.00390625, %v81_v22  ;;  %v202_v55 = vsel %vm152_vm2, %v201_v11, %v197_v51 }
  0x9f   :  { %v97_v34 = vmul.f32 0.00390625, %v57_v28  ;;  %v153_v59 = vsel %vm152_vm2, %v151_v62, %v146_v49 }
  0xa0   :  { %v206_v16 = vrot.slane %v105_v61, %v157_v53 }
  0xa1   :  { %v84_v41 = vpop.xlane.xlu1 %83  ;;  %v158_v63 = vrot.slane %v97_v34, %v157_v53 }
  0xa2   :  { %v60_v48 = vpop.xlane.xlu0 %59  ;;  %v106_v43 = vmul.f32 0.00390625, %v84_v41  ;;  %v207_v47 = vsel %vm159_vm3, %v206_v16, %v202_v55 }
  0xa3   :  { %v98_v42 = vmul.f32 0.00390625, %v60_v48  ;;  %v160_v37 = vsel %vm159_vm3, %v158_v63, %v153_v59 }
  0xa4   :  { %v211_v28 = vrot.slane %v106_v43, %v164_v54 }
  0xa5   :  { %v87_v58 = vpop.xlane.xlu1 %86  ;;  %v165_v52 = vrot.slane %v98_v42, %v164_v54 }
  0xa6   :  { %v63_v10 = vpop.xlane.xlu0 %62  ;;  %v107_v31 = vmul.f32 0.00390625, %v87_v58 }
  0xa7   :  { %v99_v30 = vmul.f32 0.00390625, %v63_v10  ;;  %v167_v19 = vsel %vm166_vm4, %v165_v52, %v160_v37  ;;  %v426_v52 = vsub.s32 1, %v824_v23 }
  0xa8   :  { %v216_v48 = vrot.slane %v107_v31, %v171_v57  ;;  %v212_v31 = vsel %vm166_vm4, %v211_v28, %v207_v47  ;;  %v391_v28 = vsub.s32 0, %v824_v23 }
  0xa9   :  { %v90_v46 = vpop.xlane.xlu1 %89  ;;  %v172_v56 = vrot.slane %v99_v30, %v171_v57 }
  0xaa   :  { %v108_v22 = vmul.f32 0.00390625, %v90_v46  ;;  %v66_v36 = vpop.xlane.xlu0 %65  ;;  %v217_v54 = vsel %vm173_vm5, %v216_v48, %v212_v31 }
  0xab   :  { %v100_v41 = vmul.f32 0.00390625, %v66_v36  ;;  %v174_v57 = vsel %vm173_vm5, %v172_v56, %v167_v19 }
  0xac   :  { %v221_v58 = vrot.slane %v108_v22, %v178_v3 }
  0xad   :  { %v93_v50 = vpop.xlane.xlu1 %92  ;;  %v179_v53 = vrot.slane %v100_v41, %v178_v3 }
  0xae   :  { %v109_v43 = vmul.f32 0.00390625, %v93_v50  ;;  %v69_v36 = vpop.xlane.xlu0 %68  ;;  %v222_v60 = vsel %vm180_vm6, %v221_v58, %v217_v54 }
  0xaf   :  { %v101_v42 = vmul.f32 0.00390625, %v69_v36  ;;  %v181_v10 = vsel %vm180_vm6, %v179_v53, %v174_v57 }
  0xb0   :  { %v226_v30 = vrot.slane %v109_v43, %v185_v17 }
  0xb1   :  { %v186_v61 = vrot.slane %v101_v42, %v185_v17 }
  0xb2   :  { %v227_v29 = vsel %vm187_vm7, %v226_v30, %v222_v60  ;;  %v998_v30 = vld [vmem:[#allocation5_spill] sm:$0xff]  ;;  %v999_v60 = vld [vmem:[#allocation6_spill] sm:$0xff] }
  0xb3   :  { %v188_v34 = vsel %vm187_vm7, %v186_v61, %v181_v10  ;;  %v1000_v10 = vld [vmem:[#allocation3_spill] sm:$0xff] }
  0xb4   :  { %v229_v3 = vsel %vm228_vm8, %v227_v29, %v188_v34  ;;  %v1001_v34 = vld [vmem:[#allocation4_spill] sm:$0xff] }
  0xb5   :  { %559 = vmatmul.mubr.msk.f32.vlgmr.msra.gmra.mrb[0].mxu0 %vm230_vm9, %v229_v3 }
 0x188   :  { %v299_v40 = vpop.f32.mrb[0].mxu0 }
 0x189   :  { %v303_v7 = vmax.f32 %v299_v40, 0.0  ;;  %v560_v11 = vpop.f32.mrb[1].mxu0  ;;  %v1002_v40 = vld [vmem:[#allocation7_spill] sm:$0xff] }
 0x18a   :  { %v1003_v11 = vld [vmem:[#allocation8_spill] sm:$0xff] }
 0x18b   :  { %564 = vmatmul.mubr.msk.f32.vlgmr.msra.gmra.mrb[0].mxu1 %vm305_vm11, %v303_v7 }
 0x25e   :  { %v379_v46 = vpop.f32.mrb[0].mxu1 }
 0x25f   :  { %v530_v62 = vmul.f32 -1.442695, %v379_v46  ;;  %v565_v16 = vpop.f32.mrb[1].mxu1 }
 0x261   :  { %581 = vpow2.f32 %v530_v62 }
 0x26b   :  { %v582_v22 = vpop.eup %581 }
 0x26c   :  { %v386_v63 = vadd.f32 1.0, %v582_v22 }
 0x26e   :  { %583 = vrcp.f32 %v386_v63 }
 0x278   :  { %v584_v41 = vpop.eup %583 }
 0x279   :  { %v392_v51 = vrot.slane %v584_v41, %v391_v28  ;;  %v427_v48 = vrot.slane %v584_v41, %v426_v52 }
 0x27b   :  { %398 = vbcast.lane.b32.xlu1 %v392_v51, 264  ;;  %394 = vbcast.lane.b32.xlu0 %v392_v51, 256 }
 0x27f   :  { %402 = vbcast.lane.b32.xlu1 %v392_v51, 272  ;;  %410 = vbcast.lane.b32.xlu0 %v392_v51, 288 }
 0x283   :  { %406 = vbcast.lane.b32.xlu1 %v392_v51, 280  ;;  %418 = vbcast.lane.b32.xlu0 %v392_v51, 304 }
 0x287   :  { %414 = vbcast.lane.b32.xlu1 %v392_v51, 296  ;;  %429 = vbcast.lane.b32.xlu0 %v427_v48, 256 }
 0x28b   :  { %422 = vbcast.lane.b32.xlu1 %v392_v51, 312  ;;  %437 = vbcast.lane.b32.xlu0 %v427_v48, 272 }
 0x28f   :  { %433 = vbcast.lane.b32.xlu1 %v427_v48, 264  ;;  %445 = vbcast.lane.b32.xlu0 %v427_v48, 288 }
 0x293   :  { %441 = vbcast.lane.b32.xlu1 %v427_v48, 280  ;;  %453 = vbcast.lane.b32.xlu0 %v427_v48, 304 }
 0x297   :  { %449 = vbcast.lane.b32.xlu1 %v427_v48, 296 }
 0x29b   :  { %457 = vbcast.lane.b32.xlu1 %v427_v48, 312 }
 0x2ed   :  { %v399_v17 = vpop.permute.xlu1 %398  ;;  %v395_v49 = vpop.permute.xlu0 %394 }
 0x2ee   :  { %v461_v55 = vmul.f32 %v399_v17, %v645_v8  ;;  %v462_v56 = vmul.f32 %v399_v17, %v650_v9  ;;  %v459_v23 = vmul.f32 %v395_v49, %v621_v2  ;;  %v460_v58 = vmul.f32 %v395_v49, %v628_v4 }
 0x2f0   :  { %493 = vst [vmem:[%s982_s3 + $0x10] sm:$0xff] %v461_v55  ;;  %494 = vst [vmem:[%s982_s3 + $0x18] sm:$0xff] %v462_v56 }
 0x2f1   :  { %491 = vst [vmem:[%s982_s3] sm:$0xff] %v459_v23  ;;  %492 = vst [vmem:[%s982_s3 + $0x8] sm:$0xff] %v460_v58  ;;  %v403_v8 = vpop.permute.xlu1 %402  ;;  %v411_v2 = vpop.permute.xlu0 %410 }
 0x2f2   :  { %v463_v4 = vmul.f32 %v403_v8, %v669_v14  ;;  %v464_v9 = vmul.f32 %v403_v8, %v674_v15  ;;  %v467_v50 = vmul.f32 %v411_v2, %v717_v26  ;;  %v468_v59 = vmul.f32 %v411_v2, %v722_v27 }
 0x2f4   :  { %495 = vst [vmem:[%s982_s3 + $0x20] sm:$0xff] %v463_v4  ;;  %496 = vst [vmem:[%s982_s3 + $0x28] sm:$0xff] %v464_v9 }
 0x2f5   :  { %499 = vst [vmem:[%s982_s3 + $0x40] sm:$0xff] %v467_v50  ;;  %500 = vst [vmem:[%s982_s3 + $0x48] sm:$0xff] %v468_v59  ;;  %v407_v14 = vpop.permute.xlu1 %406  ;;  %v419_v15 = vpop.permute.xlu0 %418 }
 0x2f6   :  { %v465_v26 = vmul.f32 %v407_v14, %v693_v20  ;;  %v466_v27 = vmul.f32 %v407_v14, %v698_v21  ;;  %v471_v47 = vmul.f32 %v419_v15, %v765_v38  ;;  %v472_v53 = vmul.f32 %v419_v15, %v770_v39 }
 0x2f8   :  { %497 = vst [vmem:[%s982_s3 + $0x30] sm:$0xff] %v465_v26  ;;  %498 = vst [vmem:[%s982_s3 + $0x38] sm:$0xff] %v466_v27 }
 0x2f9   :  { %503 = vst [vmem:[%s982_s3 + $0x60] sm:$0xff] %v471_v47  ;;  %504 = vst [vmem:[%s982_s3 + $0x68] sm:$0xff] %v472_v53  ;;  %v415_v20 = vpop.permute.xlu1 %414  ;;  %v430_v21 = vpop.permute.xlu0 %429 }
 0x2fa   :  { %v469_v38 = vmul.f32 %v415_v20, %v741_v32  ;;  %v470_v39 = vmul.f32 %v415_v20, %v746_v33  ;;  %v475_v43 = vmul.f32 %v430_v21, %v611_v0  ;;  %v476_v36 = vmul.f32 %v430_v21, %v616_v1 }
 0x2fc   :  { %501 = vst [vmem:[%s982_s3 + $0x50] sm:$0xff] %v469_v38  ;;  %502 = vst [vmem:[%s982_s3 + $0x58] sm:$0xff] %v470_v39 }
 0x2fd   :  { %507 = vst [vmem:[%s982_s3 + $0x80] sm:$0xff] %v475_v43  ;;  %508 = vst [vmem:[%s982_s3 + $0x88] sm:$0xff] %v476_v36  ;;  %v423_v32 = vpop.permute.xlu1 %422  ;;  %v438_v0 = vpop.permute.xlu0 %437 }
 0x2fe   :  { %v473_v1 = vmul.f32 %v423_v32, %v789_v44  ;;  %v474_v33 = vmul.f32 %v423_v32, %v794_v45  ;;  %v479_v37 = vmul.f32 %v438_v0, %v659_v12  ;;  %v480_v31 = vmul.f32 %v438_v0, %v664_v13 }
 0x300   :  { %505 = vst [vmem:[%s982_s3 + $0x70] sm:$0xff] %v473_v1  ;;  %506 = vst [vmem:[%s982_s3 + $0x78] sm:$0xff] %v474_v33 }
 0x301   :  { %511 = vst [vmem:[%s982_s3 + $0xa0] sm:$0xff] %v479_v37  ;;  %512 = vst [vmem:[%s982_s3 + $0xa8] sm:$0xff] %v480_v31  ;;  %v434_v44 = vpop.permute.xlu1 %433  ;;  %v446_v12 = vpop.permute.xlu0 %445 }
 0x302   :  { %v477_v13 = vmul.f32 %v434_v44, %v633_v5  ;;  %v478_v45 = vmul.f32 %v434_v44, %v638_v6  ;;  %v483_v42 = vmul.f32 %v446_v12, %v707_v24  ;;  %v484_v19 = vmul.f32 %v446_v12, %v712_v25  ;;  %v997_v25 = vld [vmem:[#allocation2_spill] sm:$0xff] }
 0x304   :  { %509 = vst [vmem:[%s982_s3 + $0x90] sm:$0xff] %v477_v13  ;;  %510 = vst [vmem:[%s982_s3 + $0x98] sm:$0xff] %v478_v45 }
 0x305   :  { %515 = vst [vmem:[%s982_s3 + $0xc0] sm:$0xff] %v483_v42  ;;  %516 = vst [vmem:[%s982_s3 + $0xc8] sm:$0xff] %v484_v19  ;;  %v442_v5 = vpop.permute.xlu1 %441  ;;  %v454_v6 = vpop.permute.xlu0 %453 }
 0x306   :  { %v481_v24 = vmul.f32 %v442_v5, %v683_v18  ;;  %v482_v54 = vmul.f32 %v442_v5, %v997_v25  ;;  %v487_v57 = vmul.f32 %v454_v6, %v998_v30  ;;  %v488_v61 = vmul.f32 %v454_v6, %v999_v60 }
 0x308   :  { %513 = vst [vmem:[%s982_s3 + $0xb0] sm:$0xff] %v481_v24  ;;  %514 = vst [vmem:[%s982_s3 + $0xb8] sm:$0xff] %v482_v54 }
 0x309   :  { %519 = vst [vmem:[%s982_s3 + $0xe0] sm:$0xff] %v487_v57  ;;  %520 = vst [vmem:[%s982_s3 + $0xe8] sm:$0xff] %v488_v61  ;;  %v450_v18 = vpop.permute.xlu1 %449 }
 0x30a   :  { %v485_v29 = vmul.f32 %v450_v18, %v1000_v10  ;;  %v486_v3 = vmul.f32 %v450_v18, %v1001_v34 }
 0x30c   :  { %517 = vst [vmem:[%s982_s3 + $0xd0] sm:$0xff] %v485_v29  ;;  %518 = vst [vmem:[%s982_s3 + $0xd8] sm:$0xff] %v486_v3 }
 0x30d   :  { %v458_v35 = vpop.permute.xlu1 %457 }
 0x30e   :  { %v489_v7 = vmul.f32 %v458_v35, %v1002_v40  ;;  %v490_v46 = vmul.f32 %v458_v35, %v1003_v11 }
 0x310   :  { %521 = vst [vmem:[%s982_s3 + $0xf0] sm:$0xff] %v489_v7  ;;  %522 = vst [vmem:[%s982_s3 + $0xf8] sm:$0xff] %v490_v46 }

</bundles_post_ra>
